<compile_context>
chip_gen: v5e
topology: v5e:2x2
jax: 0.10.0
libtpu: 0.0.40
codegen_flags: <defaults>
</compile_context>

<pallas_src>
import functools

import jax
import jax.numpy as jnp
from jax.experimental import pallas as pl
from jax.experimental.pallas import tpu as pltpu


def _conv1x1_kernel(w_ref, x_ref, o_ref):
    # w_ref: (Cout, Cin)   x_ref: (Cin, tL)   o_ref: (Cout, tL)
    o_ref[...] = jnp.dot(
        w_ref[...], x_ref[...], preferred_element_type=jnp.float32
    ).astype(o_ref.dtype)


def _pick_lane_tile(hw, max_tile=2048):
    """Pick a lane tile (multiple of 128) and the padded H*W extent."""
    hw128 = ((hw + 127) // 128) * 128
    if hw128 <= max_tile:
        return hw128, hw128
    # Prefer the largest multiple of 128 that divides hw128 and fits the cap
    # (zero padding waste); fall back to max_tile with padding if that
    # divisor would be tiny.
    blocks = hw128 // 128
    best = 1
    for d in range(1, blocks + 1):
        if blocks % d == 0 and d * 128 <= max_tile:
            best = d
    tl = best * 128
    if tl < 512:
        tl = max_tile
    hw_pad = ((hw128 + tl - 1) // tl) * tl
    return tl, hw_pad


@functools.partial(jax.jit, static_argnames=("tl",))
def _conv1x1_parallel_pallas(w_all, x_all, *, tl):
    """w_all: (P, Cout, Cin), x_all: (P, N, Cin, HWp) -> (P, N, Cout, HWp)."""
    P, N, Cin, HWp = x_all.shape
    Cout = w_all.shape[1]
    assert HWp % tl == 0

    grid = (P, N, HWp // tl)

    # Explicit VMEM budget: double-buffered X tile + out tile + weight tile,
    # with generous headroom, clamped so it is valid on v7x (64 MiB physical)
    # as well as v5e/v6e (128 MiB physical).
    dt_bytes = jnp.dtype(x_all.dtype).itemsize
    per_step = 2 * (Cin + Cout) * tl * dt_bytes + 2 * Cout * Cin * dt_bytes
    vmem_bytes = int(min(max(4 * per_step, 16 * 1024 * 1024), 48 * 1024 * 1024))

    return pl.pallas_call(
        _conv1x1_kernel,
        out_shape=jax.ShapeDtypeStruct((P, N, Cout, HWp), x_all.dtype),
        grid_spec=pltpu.PrefetchScalarGridSpec(
            num_scalar_prefetch=0,
            grid=grid,
            in_specs=[
                # Weight for branch p stays resident while p is fixed.
                pl.BlockSpec((None, Cout, Cin), lambda p, n, l: (p, 0, 0)),
                # One (Cin, tl) activation slab per grid step; lanes = spatial.
                pl.BlockSpec((None, None, Cin, tl), lambda p, n, l: (p, n, 0, l)),
            ],
            out_specs=pl.BlockSpec(
                (None, None, Cout, tl), lambda p, n, l: (p, n, 0, l)
            ),
        ),
        compiler_params=pltpu.CompilerParams(
            dimension_semantics=("parallel", "parallel", "parallel"),
            vmem_limit_bytes=vmem_bytes,
        ),
    )(w_all, x_all)


def conv1x1_parallel(x_stack, w_stack, stride=1, max_tile=2048):
    """Fused parallel 1x1 conv.

    x_stack: (P, N, Cin, H, W)  (NCHW per branch, stacked on axis 0)
    w_stack: (P, Cout, Cin)
    returns: (P, N, Cout, H', W')
    """
    if stride != 1:
        # TODO(synk): fold the stride subsampling into the kernel index_map /
        # strided DMA instead of materializing a strided slice in HBM first.
        x_stack = x_stack[:, :, :, ::stride, ::stride]
    P, N, Cin, H, W = x_stack.shape
    Cout = w_stack.shape[1]
    hw = H * W
    tl, hw_pad = _pick_lane_tile(hw, max_tile)
    # Pure reshape (NCHW already has H*W contiguous) — no transpose passes.
    x_flat = x_stack.reshape(P, N, Cin, hw)
    if hw_pad != hw:
        x_flat = jnp.pad(x_flat, ((0, 0), (0, 0), (0, 0), (0, hw_pad - hw)))
    y_flat = _conv1x1_parallel_pallas(w_stack, x_flat, tl=tl)
    if hw_pad != hw:
        y_flat = y_flat[..., :hw]
    return y_flat.reshape(P, N, Cout, H, W)


class Conv1x1Parallel:
    """JAX/Pallas equivalent of the PyTorch conv1x1Parallel module."""

    def __init__(self, in_planes, out_planes, num_parallel, stride=1,
                 bias=False, key=None):
        assert not bias, "reference module is used with bias=False"
        self.stride = stride
        self.num_parallel = num_parallel
        if key is None:
            key = jax.random.PRNGKey(0)
        # Deterministic init mimicking PyTorch's kaiming-uniform bound for a
        # 1x1 conv: U(-b, b) with b = 1/sqrt(fan_in), fan_in = in_planes.
        bound = 1.0 / jnp.sqrt(float(in_planes))
        self.weights = jax.random.uniform(
            key, (num_parallel, out_planes, in_planes), dtype=jnp.float32,
            minval=-bound, maxval=bound,
        )

    def __call__(self, x_parallel):
        x_stack = jnp.stack(x_parallel, axis=0)
        y_stack = conv1x1_parallel(x_stack, self.weights, stride=self.stride)
        return [y_stack[i] for i in range(self.num_parallel)]


if __name__ == "__main__":
    key = jax.random.PRNGKey(0)
    k_mod, k_x0, k_x1, k_x2 = jax.random.split(key, 4)

    in_planes, out_planes, num_parallel = 4, 8, 2
    N, H, W = 2, 16, 16

    # --- Case 1: stride 1, H*W multiple of 128 -----------------------------
    module = Conv1x1Parallel(in_planes, out_planes, num_parallel, key=k_mod)
    x0 = jax.random.normal(k_x0, (N, in_planes, H, W), dtype=jnp.float32)
    x1 = jax.random.normal(k_x1, (N, in_planes, H, W), dtype=jnp.float32)
    x_parallel = [x0, x1]

    outs = module(x_parallel)
    outs = [jax.block_until_ready(o) for o in outs]

    for i, (x, o) in enumerate(zip(x_parallel, outs)):
        ref = jnp.einsum("oc,nchw->nohw", module.weights[i], x)
        assert o.shape == (N, out_planes, H, W), o.shape
        assert jnp.allclose(o, ref, atol=1e-5, rtol=1e-5), f"mismatch branch {i}"

    # --- Case 2: H*W not a multiple of 128 (exercises lane padding) --------
    Hs, Ws = 10, 10
    xs = jax.random.normal(k_x2, (N, in_planes, Hs, Ws), dtype=jnp.float32)
    module_s = Conv1x1Parallel(in_planes, out_planes, 1, key=k_mod)
    (o_s,) = module_s([xs])
    o_s = jax.block_until_ready(o_s)
    ref_s = jnp.einsum("oc,nchw->nohw", module_s.weights[0], xs)
    assert o_s.shape == (N, out_planes, Hs, Ws), o_s.shape
    assert jnp.allclose(o_s, ref_s, atol=1e-5, rtol=1e-5), "mismatch (padded case)"

    # --- Case 3: stride 2 ----------------------------------------------------
    module_st = Conv1x1Parallel(in_planes, out_planes, 1, stride=2, key=k_mod)
    (o_st,) = module_st([x0])
    o_st = jax.block_until_ready(o_st)
    ref_st = jnp.einsum("oc,nchw->nohw", module_st.weights[0],
                        x0[:, :, ::2, ::2])
    assert o_st.shape == (N, out_planes, H // 2, W // 2), o_st.shape
    assert jnp.allclose(o_st, ref_st, atol=1e-5, rtol=1e-5), "mismatch (stride case)"

    print("KERNEL_OK")
</pallas_src>

<mosaic_0001>
module attributes {stable_mosaic.version = 11 : i64} {
  func.func @_conv1x1_kernel(%arg0: i32, %arg1: i32, %arg2: i32, %arg3: memref<1x8x4xf32, #tpu.memory_space<vmem>>, %arg4: memref<1x1x4x256xf32, #tpu.memory_space<vmem>>, %arg5: memref<1x1x8x256xf32, #tpu.memory_space<vmem>>) attributes {dimension_semantics = [#tpu.dimension_semantics<parallel>, #tpu.dimension_semantics<parallel>, #tpu.dimension_semantics<parallel>], iteration_bounds = array<i64: 2, 2, 1>, scalar_prefetch = 0 : i64, scratch_operands = 0 : i64, tpu.core_type = #tpu.core_type<tc>, window_params = [{transform_indices = @transform_0, window_bounds = array<i64: 1, 8, 4>}, {transform_indices = @transform_1, window_bounds = array<i64: 1, 1, 4, 256>}, {transform_indices = @transform_2, window_bounds = array<i64: 1, 1, 8, 256>}]} {
    %c0 = arith.constant 0 : index
    %c0_0 = arith.constant 0 : index
    %c0_1 = arith.constant 0 : index
    %0 = vector.load %arg3[%c0, %c0_0, %c0_1] : memref<1x8x4xf32, #tpu.memory_space<vmem>>, vector<1x8x4xf32>
    %1 = vector.shape_cast %0 : vector<1x8x4xf32> to vector<8x4xf32>
    %c0_2 = arith.constant 0 : index
    %c0_3 = arith.constant 0 : index
    %c0_4 = arith.constant 0 : index
    %c0_5 = arith.constant 0 : index
    %2 = vector.load %arg4[%c0_2, %c0_3, %c0_4, %c0_5] : memref<1x1x4x256xf32, #tpu.memory_space<vmem>>, vector<1x1x4x256xf32>
    %3 = vector.shape_cast %2 : vector<1x1x4x256xf32> to vector<4x256xf32>
    %cst = arith.constant dense<0.000000e+00> : vector<8x256xf32>
    %4 = tpu.matmul %1, %3, %cst {dimension_numbers = #tpu.dot_dimension_numbers<[1], [0], [0], [1], [0, 0, 1, 1], [], []>} : vector<8x4xf32>, vector<4x256xf32>, vector<8x256xf32> -> vector<8x256xf32>
    %c0_6 = arith.constant 0 : index
    %c0_7 = arith.constant 0 : index
    %c0_8 = arith.constant 0 : index
    %c0_9 = arith.constant 0 : index
    %5 = vector.load %arg5[%c0_6, %c0_7, %c0_8, %c0_9] : memref<1x1x8x256xf32, #tpu.memory_space<vmem>>, vector<1x1x8x256xf32>
    %6 = vector.shape_cast %5 : vector<1x1x8x256xf32> to vector<8x256xf32>
    %7 = vector.shape_cast %4 : vector<8x256xf32> to vector<1x1x8x256xf32>
    tpu.vector_store %arg5[%c0_6, %c0_7, %c0_8, %c0_9], %7 {strides = array<i32>} : memref<1x1x8x256xf32, #tpu.memory_space<vmem>>, vector<1x1x8x256xf32>,
    return
  }
  func.func @transform_0(%arg0: i32, %arg1: i32, %arg2: i32) -> (i32, i32, i32) {
    %c0_i32 = arith.constant 0 : i32
    %c0_i32_0 = arith.constant 0 : i32
    %c0_i32_1 = arith.constant 0 : i32
    return %arg0, %c0_i32, %c0_i32_0 : i32, i32, i32
  }
  func.func @transform_1(%arg0: i32, %arg1: i32, %arg2: i32) -> (i32, i32, i32, i32) {
    %c0_i32 = arith.constant 0 : i32
    %c0_i32_0 = arith.constant 0 : i32
    return %arg0, %arg1, %c0_i32, %arg2 : i32, i32, i32, i32
  }
  func.func @transform_2(%arg0: i32, %arg1: i32, %arg2: i32) -> (i32, i32, i32, i32) {
    %c0_i32 = arith.constant 0 : i32
    %c0_i32_0 = arith.constant 0 : i32
    return %arg0, %arg1, %c0_i32, %arg2 : i32, i32, i32, i32
  }
}

</mosaic_0001>

<bundles_post_ra>
// kernel: _conv1x1_parallel_pallas.1
= control target key start
LH: loop header
LB: loop body
LE: loop exit
PB: predicated region body
PF: predicated region fallthrough
CT: control target
= control target key end

     0   :  { %7 = vsyncpa [#allocation3], 0  ;;  %s789_s0 = inlined_call_operand.vmem [shape: f32[2,8,4], index: 0, kind: input, shape index: {}]   ;;  %s790_s1 = inlined_call_operand.hbm [shape: f32[2,2,4,256], index: 1, kind: input, shape index: {}]   ;;  %s791_s2 = inlined_call_operand.hbm [shape: f32[2,2,8,256], index: 2, kind: output, shape index: {}]  }
   0x1   :  { %9 = vsyncpa [#allocation3 + $0x1], 0 }
   0x2   :  { %10 = vsyncpa [#allocation4], 0 }
   0x3   :  { %12 = vsyncpa [#allocation4 + $0x1], 0  ;;  %s641_s9 = smov 0   ;;  %s643_s10 = smov 0  }
   0x4   :  { %s645_s11 = smov 0   ;;  %s647_s12 = smov 0  }
   0x5   :  { %s649_s13 = smov 0   ;;  %s651_s14 = smov 0  }
   0x6   :  { %s653_s15 = smov 0   ;;  %s655_s16 = smov 0  }
   0x7 LB: > { %s396_s17 = sadd.s32 4294967295, %s624_s16   ;;  %s397_s18 = sadd.s32 4294967294, %s624_s16   ;;  %s624_s16 = sphi %s655_s16, %s18_s16   ;;  %s620_s15 = sphi %s653_s15, %s802_s15   ;;  %s616_s14 = sphi %s651_s14, %s801_s14   ;;  %s612_s13 = sphi %s649_s13, %s800_s13   ;;  %s608_s12 = sphi %s647_s12, %s799_s12   ;;  %s604_s11 = sphi %s645_s11, %s798_s11   ;;  %s600_s10 = sphi %s643_s10, %s797_s10   ;;  %s596_s9 = sphi %s641_s9, %s796_s9  }
   0x8   : > { %s33_s19 = sadd.s32 1, %s616_s14  ;;  %s37_s20 = sadd.s32 1, %s620_s15 }
   0x9   : > { %p35_p0 = scmp.ge.s32.totalorder %s33_s19, 2  ;;  %s74_s21 = sadd.s32 1, %s604_s11 }
   0xa   : > { %p81_p1 = scmp.ne.s32.totalorder %s604_s11, %s600_s10  ;;  %p82_p2 = scmp.eq.s32.totalorder %s624_s16, 0 }
   0xb   : > { %s804_s19 = smov (%p35_p0, %s33_s19), 0  ;;  %s806_s20 = smov (!%p35_p0, %s37_s20), %s620_s15 }
   0xc   : > { %s68_s22 = ssub.s32 %s616_s14, %s804_s19  ;;  %p694_p3 = por %p82_p2, %p81_p1 }
   0xd   : > { %p39_p4 = scmp.ge.s32.totalorder %s806_s20, 2  ;;  %p87_p5 = scmp.ne.s32.totalorder %s600_s10, %s596_s9 }
   0xe   : > { %p88_p6 = scmp.eq.s32.totalorder %s396_s17, 0  ;;  %p115_p7 = scmp.eq.s32.totalorder %s396_s17, 3 }
   0xf   : > { %s808_s20 = smov (%p39_p4, %s806_s20), 0  ;;  %p121_p10 = scmp.eq.s32.totalorder %s397_s18, 3 }
  0x10   : > { %p702_p8 = por %p88_p6, %p87_p5  ;;  %p706_p9 = por %p115_p7, %p81_p1 }
  0x11   : > { %s67_s26 = ssub.s32 %s620_s15, %s808_s20  ;;  %p712_p12 = por %p121_p10, %p87_p5 }
  0x12   : > { %s69_s27 = sor.u32 %s68_s22, %s67_s26  ;;  %p430_p13 = scmp.lt.s32.totalorder %s624_s16, 4 }
  0x13   : > { %p72_p11 = scmp.eq.s32.totalorder %s69_s27, 0  ;;  %s148_s29 = sand.u32 1, %s604_s11  }
  0x14   : > { %s400_s3 = sshll.u32 %s148_s29, 3  ;;  %s401_s4 = sshll.u32 %s616_s14, 1 }
  0x15   : > { %s719_s30 = scalar_select %p72_p11, %s604_s11, %s74_s21  }
  0x16   : > { %s402_s5 = sshll.u32 %s620_s15, 2  ;;  %s152_s6 = scalar_lea.vmem [#allocation2], %s400_s3 }
  0x17   : > { %s165_s7 = sshll.u32 %s152_s6, 4  ;;  %s159_s8 = sadd.s32 %s402_s5, %s401_s4  ;;  %s166_s7 = int_to_ptr.vmem [resolvable:$true] %s165_s7 }
  0x18   : > { %s403_s17 = sshll.u32 %s159_s8, 2  ;;  %p423_p0 = pnand %p430_p13, %p694_p3 }
  0x19   : > { %s161_s26 = scalar_lea.hbm %s790_s1, %s403_s17  ;;  %p404_p1 = scmp.ge.s32.totalorder %s624_s16, 1 }
  0x1a   : > { %s163_s27 = sshll.u32 %s161_s26, 4  ;;  %p170_p2 = scmp.lt.s32.totalorder %s624_s16, 5  ;;  %s164_s27 = int_to_ptr.hbm [resolvable:$true] %s163_s27 }
  0x1b   : > { %s149_s21 = scalar_lea.sflag [#allocation3], %s148_s29 }
  0x1c   : > { %425 = dma.hbm_to_vmem [thread:$0]  (!%p423_p0), %s164_s27, 128, %s166_s7, %s149_s21  }
  0x1d   : > { %p171_p4 = pnand %p404_p1, %p170_p2 }
  0x1e   : > { %s731_s3 = sand.u32 (!%p171_p4), 1, %s600_s10  }
  0x1f   : > { %174 = sbr.rel (%p171_p4) target bundleno = 177 (0xb1), region = 28  ;;  %s405_s23 = sshll.u32 (!%p171_p4), %s731_s3, 3 }
  0x20   : > { %s177_s4 = scalar_lea.sflag (!%p171_p4), [#allocation3], %s731_s3  ;;  %s180_s5 = scalar_lea.vmem (!%p171_p4), [#allocation2], %s405_s23 }
  0x24   : > { %587 = dma.done.wait (%p702_p8), %s177_s4, 128  }
  0x25   : > { %589 = vsyncadd (%p702_p8), %s177_s4, 4294967168  ;;  %p206_p3 = scmp.lt.s32.totalorder %s612_s13, 1  ;;  %v213_v0 = vld [vmem:[%s180_s5] sm:$0xff]  ;;  %vm222_vm0 = vcmask 1043456   ;;  %vm218_vm1 = vcmask 31744   ;;  %s413_s24 = sshll.u32 %s608_s12, 1 }
  0x26   : > { %215 = vst [vmem:[#allocation1] ss:$2 sm:$0xff] %v213_v0  ;;  %s414_s18 = sshll.u32 %s612_s13, 2  ;;  %s406_s26 = sshll.u32 %s731_s3, 4 }
  0x27   : > { %s207_s29 = scalar_select %p206_p3, %s612_s13, 1 }
  0x28   : > { %s283_s22 = sadd.s32 %s414_s18, %s413_s24  ;;  %s205_s5 = scalar_lea.vmem [#allocation5], %s406_s26 }
  0x29   : > { %s407_s6 = sshll.u32 %s207_s29, 3  ;;  %s415_s27 = sshll.u32 %s283_s22, 3 }
  0x2a   : > { %s209_s17 = scalar_lea.vmem %s789_s0, %s407_s6  ;;  %s285_s4 = scalar_lea.hbm %s791_s2, %s415_s27 }
  0x2b   : > { %v212_v1 = vld [vmem:[%s209_s17] sm:$0xff]  ;;  %s287_s29 = sshll.u32 %s205_s5, 4  ;;  %s289_s6 = sshll.u32 %s285_s4, 4  ;;  %s288_s29 = int_to_ptr.vmem [resolvable:$true] %s287_s29  ;;  %s290_s6 = int_to_ptr.hbm [resolvable:$true] %s289_s6 }
  0x2c   : > { %s270_s7 = scalar_lea.sflag [#allocation4], %s731_s3  ;;  %s540_s12 = sshra.s32 %s290_s6, 4  ;;  %s541_s12 = int_to_ptr.hbm [resolvable:$true] %s540_s12 }
  0x2d   : > { %v216_v2 = vld.sshfl [vmem:[#allocation1] sm:$0xff pattern:$0x75316420]  ;;  %v217_v3 = vld.sshfl [vmem:[#allocation1 + $0x8] sm:$0xff pattern:$0x75316420]  ;;  %p547_p8 = scmp.lt.s32.totalorder %s541_s12, %s791_s2 }
  0x2e   : > { %408 = vmatpush.msk.msra.mxu0 %vm222_vm0, %v216_v2  ;;  %410 = vmatpush.msk.msra.mxu1 %vm222_vm0, %v217_v3  ;;  %s542_s13 = scalar_lea.hbm %s541_s12, 16  ;;  %s546_s24 = scalar_lea.hbm %s791_s2, 64 }
  0x2f   : > { %409 = vmatmul.msk.f32.vlgmr.msra.gmra.mxu0 %vm218_vm1, %v212_v1  ;;  %411 = vmatmul.msk.f32.vlgmr.msra.gmra.mxu1 %vm218_vm1, %v212_v1  ;;  %p543_p5 = scmp.ne.s32.totalorder %s541_s12, %s542_s13  ;;  %p548_p10 = scmp.lt.s32.totalorder %s546_s24, %s542_s13 }
  0x31   : > { %p544_p6 = pnand %p543_p5, %p706_p9  ;;  %p549_p11 = por %p548_p10, %p547_p8 }
  0x33   : > { %p545_p7 = pneg %p544_p6 }
  0x35   : > { %p550_p13 = pnand %p549_p11, %p545_p7 }
  0xac   : > { %v244_v4 = vpop.f32.mrf.mxu0  ;;  %v264_v5 = vpop.f32.mrf.mxu1 }
  0xad   : > { %267 = vst [vmem:[%s205_s5] sm:$0xff] %v244_v4 }
  0xae   : > { %268 = vst [vmem:[%s205_s5 + $0x8] sm:$0xff] %v264_v5 }
  0xaf   : > { %553 = shalt.err (!%p550_p13)
}
  0xb0   : > { %420 = dma.vmem_to_hbm [thread:$0]  (%p706_p9), %s288_s29, 256, %s290_s6, %s270_s7  }
  0xb1 PF: > { %p431_p0 = scmp.ge.s32.totalorder %s624_s16, 2  ;;  %s301_s3 = sand.u32 1, %s596_s9  }
  0xb2   : > { %s302_s26 = scalar_lea.sflag [#allocation4], %s301_s3 }
  0xb3   : > { %p427_p1 = pnand %p431_p0, %p712_p12 }
  0xb5   : > { %p428_p2 = pneg %p427_p1 }
  0xb7   : > { %591 = dma.done.wait (%p428_p2), %s302_s26, 256  }
  0xb8   : > { %593 = vsyncadd (%p428_p2), %s302_s26, 4294967040  ;;  %s18_s16 = sadd.s32 1, %s624_s16   ;;  %s796_s9 = smov %s600_s10 }
  0xb9   : > { %p15_p4 = scmp.ge.s32.totalorder %s18_s16, 6   ;;  %s797_s10 = smov %s604_s11 }
  0xba   : > { %s798_s11 = smov %s719_s30  ;;  %s799_s12 = smov %s616_s14 }
  0xbb   : > { %s800_s13 = smov %s620_s15  ;;  %s801_s14 = smov %s804_s19 }
  0xbc   : > { %s802_s15 = smov %s808_s20  ;;  %17 = sbr.rel (!%p15_p4) target bundleno = 7 (0x7), region = 76 }
  0xc1   :  { %308 = vsyncpa [#allocation3], 1 }
  0xc2   :  { %310 = vsyncpa [#allocation3 + $0x1], 1 }
  0xc3   :  { %311 = vsyncpa [#allocation4], 1 }
  0xc4   :  { %313 = vsyncpa [#allocation4 + $0x1], 1 }

</bundles_post_ra>
